<compile_context>
chip_gen: v7x
topology: tpu7x:2x2x1
jax: 0.10.0
libtpu: 0.0.40
codegen_flags: <defaults>
</compile_context>

<pallas_src>
import functools

import jax
import jax.numpy as jnp
from jax.experimental import pallas as pl
from jax.experimental.pallas import tpu as pltpu

_MIB = 1024 * 1024


# ---------------------------------------------------------------------------
# Kernel
# ---------------------------------------------------------------------------
def _expert_kernel(x_ref, w13_ref, w2t_ref, o_ref, acc_ref, *, tile_i):
    # x_ref:   (tm, D)        bf16   token tile (j-invariant -> stays resident)
    # w13_ref: (D, 2*tile_i)  bf16   [w1.T tile | w3.T tile]
    # w2t_ref: (tile_i, D)    bf16   w2.T tile
    # o_ref:   (tm, D)        bf16
    # acc_ref: (tm, D)        f32    scratch accumulator (resident across j)
    j = pl.program_id(1)

    @pl.when(j == 0)
    def _init():
        acc_ref[...] = jnp.zeros_like(acc_ref)

    x = x_ref[...]

    # One wide GEMM for gate+up projections (MXU, f32 accumulation).
    ab = jnp.dot(x, w13_ref[...], preferred_element_type=jnp.float32)  # (tm, 2*ti)
    a = ab[:, :tile_i]          # lane-aligned: tile_i is a multiple of 128
    b = ab[:, tile_i:]

    # silu(a) * b, cast back to bf16 (matches torch bf16 intermediates).
    h = (a * jax.nn.sigmoid(a) * b).astype(x.dtype)                    # (tm, ti)

    # Partial down-projection for this inter_dim tile, accumulated in f32.
    acc_ref[...] += jnp.dot(h, w2t_ref[...], preferred_element_type=jnp.float32)

    @pl.when(j == pl.num_programs(1) - 1)
    def _finalize():
        o_ref[...] = acc_ref[...].astype(o_ref.dtype)


# ---------------------------------------------------------------------------
# Tiling / config helpers
# ---------------------------------------------------------------------------
def _round_up(x, m):
    return ((x + m - 1) // m) * m


def _detect_generation():
    try:
        kind = jax.devices()[0].device_kind.lower()
    except Exception:
        kind = ""
    if "v7" in kind:
        return "v7x"
    if "v6" in kind:
        return "v6e"
    if "v5" in kind:
        return "v5e"
    return "unknown"


# tile_m sets flops/byte on the streamed weights; vmem is the scoped limit we
# request (well under physical on v5e/v6e, ~75% of the 64 MiB per-TC on v7x).
_GEN_CFG = {
    "v6e":     dict(tile_m=512, tile_i=512, granule=256, vmem=100 * _MIB, num_tc=1),
    "v5e":     dict(tile_m=256, tile_i=256, granule=128, vmem=100 * _MIB, num_tc=1),
    "v7x":     dict(tile_m=384, tile_i=256, granule=256, vmem=48 * _MIB,  num_tc=2),
    "unknown": dict(tile_m=256, tile_i=256, granule=128, vmem=48 * _MIB,  num_tc=1),
}


def _vmem_footprint(tm, ti, dim, w_bytes=2):
    """Bytes of VMEM for the double-buffered tile set + accumulator."""
    buf = 2  # BlockSpec double buffering
    x_b = buf * tm * dim * w_bytes
    w13_b = buf * dim * (2 * ti) * w_bytes
    w2t_b = buf * ti * dim * w_bytes
    o_b = buf * tm * dim * w_bytes
    acc_b = tm * dim * 4
    return x_b + w13_b + w2t_b + o_b + acc_b


def _pick_tile_i(inter_dim, requested, granule):
    """Lane-aligned inter_dim tile; inter_dim gets zero-padded up to a multiple."""
    inter_up = _round_up(inter_dim, 128)
    if inter_up <= requested:
        return inter_up  # whole (padded) inter_dim in a single j-step
    return max(granule, (requested // granule) * granule)


# ---------------------------------------------------------------------------
# Wrapper
# ---------------------------------------------------------------------------
def expert_forward(x, w1, w2, w3, *, tile_m=None, tile_i=None):
    """x: [..., dim] bf16; w1, w3: [inter_dim, dim]; w2: [dim, inter_dim]."""
    gen = _detect_generation()
    cfg = _GEN_CFG[gen]

    vmem_limit = cfg["vmem"]
    try:
        cap = pltpu.get_tpu_info().vmem_capacity_bytes
        vmem_limit = min(vmem_limit, int(cap * 0.75))
    except Exception:
        pass

    orig_shape = x.shape
    dim = orig_shape[-1]
    inter_dim = w1.shape[0]

    x2d = x.reshape(-1, dim)
    T = x2d.shape[0]

    # ---- token tile -------------------------------------------------------
    tm = tile_m if tile_m is not None else cfg["tile_m"]
    tm = max(16, (tm // 16) * 16)            # bf16 sublane packing
    if T < tm:
        tm = _round_up(T, 16)
    # Megacore (v7x): guarantee >= 2 token tiles so both TensorCores get work,
    # but only when there are enough tokens to make the split worthwhile.
    if cfg["num_tc"] >= 2 and T >= 32 and _round_up(T, tm) // tm < 2:
        tm = _round_up((T + 1) // 2, 16)

    # ---- inter_dim tile ---------------------------------------------------
    req_ti = tile_i if tile_i is not None else cfg["tile_i"]
    ti = _pick_tile_i(inter_dim, req_ti, cfg["granule"])

    # Shrink tiles until the tile set fits ~90% of the scoped-VMEM budget
    # (headroom for Mosaic internal scratch and the (tm, 2*ti) f32 temp).
    budget = int(vmem_limit * 0.9)
    while _vmem_footprint(tm, ti, dim) > budget:
        if ti > 128:
            ti = max(128, ti - 128)
        elif tm > 16:
            tm = max(16, ((tm // 2) // 16) * 16)
        else:
            break

    # ---- padding ----------------------------------------------------------
    T_pad = _round_up(T, tm)
    if T_pad != T:
        x2d = jnp.pad(x2d, ((0, T_pad - T), (0, 0)))

    I_pad = _round_up(inter_dim, ti)
    if I_pad != inter_dim:
        pad_i = I_pad - inter_dim
        w1 = jnp.pad(w1, ((0, pad_i), (0, 0)))
        w3 = jnp.pad(w3, ((0, pad_i), (0, 0)))
        w2 = jnp.pad(w2, ((0, 0), (0, pad_i)))
    n_i = I_pad // ti
    n_m = T_pad // tm

    # ---- weight prep (plain JAX glue, done once) --------------------------
    # Interleave w1.T / w3.T per inter_dim tile -> one wide gate+up GEMM per
    # step; transpose w2 so the down projection is a row-major matmul.
    w1t = w1.T.reshape(dim, n_i, ti)
    w3t = w3.T.reshape(dim, n_i, ti)
    w13 = jnp.concatenate([w1t, w3t], axis=2).reshape(dim, 2 * I_pad)
    w2t = w2.T  # (I_pad, dim)

    kernel = functools.partial(_expert_kernel, tile_i=ti)

    wb = 2  # bf16 bytes
    cost = pl.CostEstimate(
        flops=6 * T_pad * dim * I_pad,
        transcendentals=T_pad * I_pad,
        # x read + out write once; weights streamed once per token tile.
        bytes_accessed=2 * T_pad * dim * wb + n_m * 3 * dim * I_pad * wb,
    )

    out2d = pl.pallas_call(
        kernel,
        out_shape=jax.ShapeDtypeStruct((T_pad, dim), x.dtype),
        grid_spec=pltpu.PrefetchScalarGridSpec(
            num_scalar_prefetch=0,
            grid=(n_m, n_i),                               # reduction axis last
            in_specs=[
                pl.BlockSpec((tm, dim), lambda i, j: (i, 0)),      # x tile
                pl.BlockSpec((dim, 2 * ti), lambda i, j: (0, j)),  # [w1t|w3t] tile
                pl.BlockSpec((ti, dim), lambda i, j: (j, 0)),      # w2t tile
            ],
            out_specs=pl.BlockSpec((tm, dim), lambda i, j: (i, 0)),
            scratch_shapes=[pltpu.VMEM((tm, dim), jnp.float32)],
        ),
        compiler_params=pltpu.CompilerParams(
            dimension_semantics=("parallel", "arbitrary"),
            vmem_limit_bytes=vmem_limit,
        ),
        cost_estimate=cost,
    )(x2d, w13, w2t)

    if T_pad != T:
        out2d = out2d[:T]
    return out2d.reshape(orig_shape)


# ---------------------------------------------------------------------------
# Reference + test
# ---------------------------------------------------------------------------
def _init_linear_weight(key, out_features, in_features, dtype=jnp.bfloat16):
    # Matches: torch.randn(out, in, dtype=bf16) * in ** -0.5
    w = jax.random.normal(key, (out_features, in_features), dtype=jnp.float32)
    return (w * (in_features ** -0.5)).astype(dtype)


def _reference(x, w1, w2, w3):
    # Pure-JAX reference of the PyTorch Expert forward.
    xf = x.astype(jnp.float32)
    a = xf @ w1.T.astype(jnp.float32)
    b = xf @ w3.T.astype(jnp.float32)
    h = (a * jax.nn.sigmoid(a) * b).astype(jnp.bfloat16).astype(jnp.float32)
    return (h @ w2.T.astype(jnp.float32)).astype(jnp.bfloat16)


if __name__ == "__main__":
    # Small shapes: batch=2, seq=8, dim=32, inter_dim=64.
    batch, seq, dim, inter_dim = 2, 8, 32, 64

    key = jax.random.PRNGKey(0)
    kx, k1, k2, k3 = jax.random.split(key, 4)

    x = jax.random.normal(kx, (batch, seq, dim), dtype=jnp.float32).astype(jnp.bfloat16)
    w1 = _init_linear_weight(k1, inter_dim, dim)   # (inter_dim, dim)
    w2 = _init_linear_weight(k2, dim, inter_dim)   # (dim, inter_dim)
    w3 = _init_linear_weight(k3, inter_dim, dim)   # (inter_dim, dim)

    out = expert_forward(x, w1, w2, w3)
    jax.block_until_ready(out)

    ref = _reference(x.reshape(-1, dim), w1, w2, w3).reshape(batch, seq, dim)
    err = jnp.max(jnp.abs(out.astype(jnp.float32) - ref.astype(jnp.float32)))
    assert out.shape == (batch, seq, dim) and out.dtype == jnp.bfloat16
    assert float(err) < 1e-1, f"max abs err {err}"

    # TODO(synk): fp8 act-quant path (gemm_impl == 'fp8') is a no-op in the
    # reference configuration and is not implemented here.
    print("KERNEL_OK")
</pallas_src>

<mosaic_0001>
module attributes {stable_mosaic.version = 11 : i64} {
  func.func @_expert_kernel(%arg0: i32, %arg1: i32, %arg2: memref<16x32xbf16, #tpu.memory_space<vmem>>, %arg3: memref<32x256xbf16, #tpu.memory_space<vmem>>, %arg4: memref<128x32xbf16, #tpu.memory_space<vmem>>, %arg5: memref<16x32xbf16, #tpu.memory_space<vmem>>, %arg6: memref<16x32xf32, #tpu.memory_space<vmem>>) attributes {dimension_semantics = [#tpu.dimension_semantics<parallel>, #tpu.dimension_semantics<arbitrary>], iteration_bounds = array<i64: 1, 1>, scalar_prefetch = 0 : i64, scratch_operands = 1 : i64, tpu.core_type = #tpu.core_type<tc>, window_params = [{transform_indices = @transform_0, window_bounds = array<i64: 16, 32>}, {transform_indices = @transform_1, window_bounds = array<i64: 32, 256>}, {transform_indices = @transform_2, window_bounds = array<i64: 128, 32>}, {transform_indices = @transform_3, window_bounds = array<i64: 16, 32>}]} {
    %c0_i32 = arith.constant 0 : i32
    %0 = arith.cmpi eq, %arg1, %c0_i32 : i32
    %1 = arith.extui %0 : i1 to i32
    %c0_i32_0 = arith.constant 0 : i32
    %2 = arith.cmpi ne, %1, %c0_i32_0 : i32
    scf.if %2 {
      %cst_14 = arith.constant 0.000000e+00 : f32
      %24 = vector.broadcast %cst_14 : f32 to vector<16x32xf32>
      %c0_15 = arith.constant 0 : index
      %c0_16 = arith.constant 0 : index
      %25 = vector.load %arg6[%c0_15, %c0_16] : memref<16x32xf32, #tpu.memory_space<vmem>>, vector<16x32xf32>
      tpu.vector_store %arg6[%c0_15, %c0_16], %24 {strides = array<i32>} : memref<16x32xf32, #tpu.memory_space<vmem>>, vector<16x32xf32>,
    } else {
    }
    %c0 = arith.constant 0 : index
    %c0_1 = arith.constant 0 : index
    %3 = vector.load %arg2[%c0, %c0_1] : memref<16x32xbf16, #tpu.memory_space<vmem>>, vector<16x32xbf16>
    %c0_2 = arith.constant 0 : index
    %c0_3 = arith.constant 0 : index
    %4 = vector.load %arg3[%c0_2, %c0_3] : memref<32x256xbf16, #tpu.memory_space<vmem>>, vector<32x256xbf16>
    %cst = arith.constant dense<0.000000e+00> : vector<16x256xf32>
    %5 = tpu.matmul %3, %4, %cst {dimension_numbers = #tpu.dot_dimension_numbers<[1], [0], [0], [1], [0, 0, 1, 1], [], []>} : vector<16x32xbf16>, vector<32x256xbf16>, vector<16x256xf32> -> vector<16x256xf32>
    %6 = vector.extract_strided_slice %5 {offsets = [0, 0], sizes = [16, 128], strides = [1, 1]} : vector<16x256xf32> to vector<16x128xf32>
    %7 = vector.extract_strided_slice %5 {offsets = [0, 128], sizes = [16, 128], strides = [1, 1]} : vector<16x256xf32> to vector<16x128xf32>
    %8 = arith.negf %6 : vector<16x128xf32>
    %9 = math.exp %8 : vector<16x128xf32>
    %cst_4 = arith.constant 1.000000e+00 : f32
    %10 = vector.broadcast %cst_4 : f32 to vector<16x128xf32>
    %11 = arith.addf %10, %9 : vector<16x128xf32>
    %12 = arith.divf %10, %11 : vector<16x128xf32>
    %13 = arith.mulf %6, %12 : vector<16x128xf32>
    %14 = arith.mulf %13, %7 : vector<16x128xf32>
    %15 = arith.truncf %14 : vector<16x128xf32> to vector<16x128xbf16>
    %c0_5 = arith.constant 0 : index
    %c0_6 = arith.constant 0 : index
    %16 = vector.load %arg6[%c0_5, %c0_6] : memref<16x32xf32, #tpu.memory_space<vmem>>, vector<16x32xf32>
    %c0_7 = arith.constant 0 : index
    %c0_8 = arith.constant 0 : index
    %17 = vector.load %arg4[%c0_7, %c0_8] : memref<128x32xbf16, #tpu.memory_space<vmem>>, vector<128x32xbf16>
    %cst_9 = arith.constant dense<0.000000e+00> : vector<16x32xf32>
    %18 = tpu.matmul %15, %17, %cst_9 {dimension_numbers = #tpu.dot_dimension_numbers<[1], [0], [0], [1], [0, 0, 1, 1], [], []>} : vector<16x128xbf16>, vector<128x32xbf16>, vector<16x32xf32> -> vector<16x32xf32>
    %19 = arith.addf %16, %18 : vector<16x32xf32>
    %c0_10 = arith.constant 0 : index
    %c0_11 = arith.constant 0 : index
    %20 = vector.load %arg6[%c0_10, %c0_11] : memref<16x32xf32, #tpu.memory_space<vmem>>, vector<16x32xf32>
    tpu.vector_store %arg6[%c0_10, %c0_11], %19 {strides = array<i32>} : memref<16x32xf32, #tpu.memory_space<vmem>>, vector<16x32xf32>,
    %c0_i32_12 = arith.constant 0 : i32
    %21 = arith.cmpi eq, %arg1, %c0_i32_12 : i32
    %22 = arith.extui %21 : i1 to i32
    %c0_i32_13 = arith.constant 0 : i32
    %23 = arith.cmpi ne, %22, %c0_i32_13 : i32
    scf.if %23 {
      %c0_14 = arith.constant 0 : index
      %c0_15 = arith.constant 0 : index
      %24 = vector.load %arg6[%c0_14, %c0_15] : memref<16x32xf32, #tpu.memory_space<vmem>>, vector<16x32xf32>
      %25 = arith.truncf %24 : vector<16x32xf32> to vector<16x32xbf16>
      %c0_16 = arith.constant 0 : index
      %c0_17 = arith.constant 0 : index
      %26 = vector.load %arg5[%c0_16, %c0_17] : memref<16x32xbf16, #tpu.memory_space<vmem>>, vector<16x32xbf16>
      tpu.vector_store %arg5[%c0_16, %c0_17], %25 {strides = array<i32>} : memref<16x32xbf16, #tpu.memory_space<vmem>>, vector<16x32xbf16>,
    } else {
    }
    return
  }
  func.func @transform_0(%arg0: i32, %arg1: i32) -> (i32, i32) {
    %c0_i32 = arith.constant 0 : i32
    %c0_i32_0 = arith.constant 0 : i32
    return %arg0, %c0_i32 : i32, i32
  }
  func.func @transform_1(%arg0: i32, %arg1: i32) -> (i32, i32) {
    %c0_i32 = arith.constant 0 : i32
    %c0_i32_0 = arith.constant 0 : i32
    return %c0_i32, %arg1 : i32, i32
  }
  func.func @transform_2(%arg0: i32, %arg1: i32) -> (i32, i32) {
    %c0_i32 = arith.constant 0 : i32
    %c0_i32_0 = arith.constant 0 : i32
    return %arg1, %c0_i32 : i32, i32
  }
  func.func @transform_3(%arg0: i32, %arg1: i32) -> (i32, i32) {
    %c0_i32 = arith.constant 0 : i32
    %c0_i32_0 = arith.constant 0 : i32
    return %arg0, %c0_i32 : i32, i32
  }
}

</mosaic_0001>

<bundles_post_ra>
// kernel: tpu_custom_call.1
= control target key start
LH: loop header
LB: loop body
LE: loop exit
PB: predicated region body
PF: predicated region fallthrough
CT: control target
= control target key end

     0   :  { %v363_v2 = vmov 0   ;;  %vm20_vm0 = vcmask 261120   ;;  %s445_s0 = inlined_call_operand.vmem [shape: bf16[16,32], index: 0, kind: input, shape index: {}]   ;;  %s446_s1 = inlined_call_operand.vmem [shape: bf16[32,256], index: 1, kind: input, shape index: {}]   ;;  %s447_s2 = inlined_call_operand.vmem [shape: bf16[128,32], index: 2, kind: input, shape index: {}]   ;;  %s448_s3 = inlined_call_operand.hbm [shape: bf16[16,32], index: 3, kind: output, shape index: {}]  }
   0x1   :  { %v316_v0 = vld [vmem:[%s446_s1 + $0x4] ss:$8 sps:$4 sm:$0xff]   ;;  %v318_v1 = vld [vmem:[%s446_s1] ss:$8 sps:$4 sm:$0xff]   ;;  %90 = vmatprep.mubr.bf16.mxu0 %v363_v2  ;;  %v319_v3 = vld [vmem:[%s446_s1 + $0x14] ss:$8 sps:$4 sm:$0xff]  }
   0x2   :  { %58 = vmatprep.subr.bf16.mxu0 %v316_v0  ;;  %v321_v4 = vld [vmem:[%s446_s1 + $0x10] ss:$8 sps:$4 sm:$0xff]   ;;  %v322_v5 = vld [vmem:[%s445_s0] sm:$0xff]  }
   0x3   :  { %59 = vmatpush1.bf16.msra.mxu0 %v318_v1 }
   0x4   :  { %60 = vmatprep.subr.bf16.mxu0 %v319_v3 }
   0x7   :  { %61 = vmatpush1.bf16.msra.mxu0 %v321_v4 }
   0x8   :  { %8 = vsyncpa [#allocation4], 0  ;;  %v323_v6 = vld [vmem:[%s447_s2] sm:$0xff]   ;;  %v364_v7 = vmov 0.0   ;;  %v324_v8 = vld [vmem:[%s447_s2 + $0x8] sm:$0xff]   ;;  %vm365_vm1 = vmmov 0  }
   0x9   :  { %290 = vmatprep.subr.bf16.mxu1 %v364_v7  ;;  %21 = vst.msk [vmem:[#allocation2] sm:$0xff] %vm20_vm0, %v364_v7  ;;  %22 = vst.msk [vmem:[#allocation2 + $0x8] sm:$0xff] %vm20_vm0, %v364_v7  ;;  %v325_v9 = vld [vmem:[%s447_s2 + $0x10] sm:$0xff]   ;;  %v326_v10 = vld [vmem:[%s447_s2 + $0x18] sm:$0xff]   ;;  %306 = vmatprep.mubr.msk.bf16.mxu1 %vm365_vm1, %v364_v7  ;;  %vm242_vm2 = vcmask 257024  }
   0xa   :  { %266 = vmatmul.mubr.msk.bf16.vlgmr.msra.gmra.mrb[0].mxu0 %vm20_vm0, %v322_v5  ;;  %291 = vmatpush3.bf16.msra.mxu1 %v323_v6  ;;  %v327_v11 = vld [vmem:[%s447_s2 + $0x20] sm:$0xff]   ;;  %v328_v12 = vld [vmem:[%s447_s2 + $0x28] sm:$0xff]   ;;  %v329_v13 = vld [vmem:[%s447_s2 + $0x30] sm:$0xff]  }
   0xb   :  { %292 = vmatprep.subr.bf16.mxu1 %v364_v7  ;;  %v330_v14 = vld [vmem:[%s447_s2 + $0x38] sm:$0xff]   ;;  %s366_s2 = smov [#allocation3]  }
   0xc   :  { %s250_s9 = sshll.u32 %s366_s2, 4  ;;  %s251_s9 = int_to_ptr.vmem [resolvable:$true] %s250_s9 }
   0xd   :  { %s339_s10 = scalar_lea.vmem %s251_s9, 128  ;;  %p344_p1 = scmp.lt.s32.totalorder %s251_s9, %s251_s9 }
   0xe   :  { %293 = vmatpush3.bf16.msra.mxu1 %v324_v8  ;;  %p340_p0 = scmp.ne.s32.totalorder %s251_s9, %s339_s10  ;;  %p345_p2 = scmp.lt.s32.totalorder %s339_s10, %s339_s10 }
   0xf   :  { %294 = vmatprep.subr.bf16.mxu1 %v364_v7 }
  0x10   :  { %v118_v32 = vld [vmem:[#allocation2] sm:$0xff]  ;;  %v119_v34 = vld [vmem:[#allocation2 + $0x8] sm:$0xff]  ;;  %p346_p3 = por %p345_p2, %p344_p1 }
  0x12   :  { %295 = vmatpush3.bf16.msra.mxu1 %v325_v9  ;;  %p347_p4 = pnand %p346_p3, %p340_p0 }
  0x13   :  { %296 = vmatprep.subr.bf16.mxu1 %v364_v7 }
  0x16   :  { %297 = vmatpush3.bf16.msra.mxu1 %v326_v10 }
  0x17   :  { %298 = vmatprep.subr.bf16.mxu1 %v364_v7 }
  0x1a   :  { %299 = vmatpush3.bf16.msra.mxu1 %v327_v11 }
  0x1b   :  { %300 = vmatprep.subr.bf16.mxu1 %v364_v7 }
  0x1e   :  { %301 = vmatpush3.bf16.msra.mxu1 %v328_v12 }
  0x1f   :  { %302 = vmatprep.subr.bf16.mxu1 %v364_v7 }
  0x22   :  { %303 = vmatpush3.bf16.msra.mxu1 %v329_v13 }
  0x23   :  { %304 = vmatprep.subr.bf16.mxu1 %v364_v7 }
  0x26   :  { %305 = vmatpush3.bf16.msra.mxu1 %v330_v14 }
  0xdd   :  { %v92_v15 = vpop.f32.mrb[0].mxu0 }
  0xde   :  { %v267_v16 = vmul.f32 -1.442695, %v92_v15  ;;  %v94_v17 = vpop.f32.mrb[1].mxu0 }
  0xdf   :  { %v96_v18 = vpop.f32.mrb[2].mxu0 }
  0xe0   :  { %331 = vpow2.f32 %v267_v16  ;;  %v268_v19 = vmul.f32 -1.442695, %v96_v18  ;;  %v98_v20 = vpop.f32.mrb[3].mxu0 }
  0xe2   :  { %333 = vpow2.f32 %v268_v19 }
  0xea   :  { %v332_v21 = vpop.eup %331 }
  0xeb   :  { %v107_v22 = vadd.f32 1.0, %v332_v21 }
  0xec   :  { %v334_v23 = vpop.eup %333 }
  0xed   :  { %335 = vrcp.f32 %v107_v22  ;;  %v108_v24 = vadd.f32 1.0, %v334_v23 }
  0xef   :  { %337 = vrcp.f32 %v108_v24 }
  0xf7   :  { %v336_v25 = vpop.eup %335 }
  0xf8   :  { %v113_v26 = vmul.f32 %v336_v25, %v92_v15 }
  0xf9   :  { %v338_v27 = vpop.eup %337 }
  0xfa   :  { %v115_v28 = vmul.f32 %v113_v26, %v94_v17  ;;  %v114_v29 = vmul.f32 %v338_v27, %v96_v18 }
  0xfc   :  { %v116_v30 = vmul.f32 %v114_v29, %v98_v20 }
  0xfe   :  { %v117_v31 = vpack.c.bf16 %v116_v30, %v115_v28 }
 0x100   :  { %307 = vmatmul.mubr.bf16.vlgmr.msra.gmra.mrb[0].mxu1 %v117_v31 }
 0x1d3   :  { %v218_v33 = vpop.f32.mrb[0].mxu1 }
 0x1d4   :  { %v225_v35 = vadd.f32 %v218_v33, %v118_v32  ;;  %v308_v36 = vpop.f32.mrb[1].mxu1 }
 0x1d5   :  { %v221_v37 = vpop.f32.mrb[2].mxu1 }
 0x1d6   :  { %227 = vst.msk [vmem:[#allocation2] sm:$0xff] %vm20_vm0, %v225_v35  ;;  %v226_v38 = vadd.f32 %v221_v37, %v119_v34  ;;  %v309_v39 = vpop.f32.mrb[3].mxu1 }
 0x1d8   :  { %228 = vst.msk [vmem:[#allocation2 + $0x8] sm:$0xff] %vm20_vm0, %v226_v38 }
 0x1dd   :  { %v232_v40 = vld [vmem:[#allocation2] sm:$0xff] }
 0x1de   :  { %v279_v41 = vpack.c.bf16 %v232_v40, %v232_v40 }
 0x1df   :  { %v233_v42 = vld [vmem:[#allocation2 + $0x8] sm:$0xff] }
 0x1e0   :  { %v280_v43 = vpack.c.bf16 %v233_v42, %v233_v42  ;;  %243 = vst.msk [vmem:[#allocation3] sm:$0xf] %vm242_vm2, %v279_v41 }
 0x1e2   :  { %244 = vst.msk [vmem:[#allocation3 + $0x4] sm:$0xf] %vm242_vm2, %v280_v43 }
 0x1e3   :  { %350 = shalt.err (!%p347_p4)
}
 0x1e4   :  { %s351_s13 = scalar_lea.hbm %s448_s3, 128 }
 0x1e5   :  { %p352_p5 = scmp.ne.s32.totalorder %s448_s3, %s351_s13  ;;  %p355_p6 = scmp.lt.u32.totalorder %s351_s13, %s448_s3 }
 0x1e7   :  { %p357_p7 = pnand %p355_p6, %p352_p5 }
 0x1e9   :  { %360 = shalt.err (!%p357_p7)
}
 0x1ea   :  { %s367_s18 = smov 64   ;;  %s368_s19 = smov 4  }
 0x1eb   :  { %256 = dma.vmem_to_hbm [thread:$0]  %s251_s9, 128, %s448_s3, [#allocation4], %s367_s18, %s367_s18, %s368_s19  }
 0x1ec   :  { %361 = dma.done.wait [#allocation4], 128  }
 0x1ed   :  { %362 = vsyncadd [#allocation4], 4294967168 }
 0x1ee   :  { %260 = vsyncpa [#allocation4], 1 }

</bundles_post_ra>
